<compile_context>
chip_gen: v6e
topology: v6e:2x2x1
jax: 0.10.0
libtpu: 0.0.40
codegen_flags: <defaults>
</compile_context>

<pallas_src>
import math

import jax
import jax.numpy as jnp
import numpy as np
from jax.experimental import pallas as pl
from jax.experimental.pallas import tpu as pltpu

LANE = 128


def _round_up(x, m):
    return ((x + m - 1) // m) * m


def _pick_batch_tile(B, S, KDp):
    """Largest 8-aligned divisor of B whose im2col block stays ~<=2 MiB."""
    if B <= 8:
        return B
    budget_rows = max(8, (2 << 20) // (S * KDp * 4))
    tb = 0
    for cand in range(8, min(B, budget_rows) + 1, 8):
        if B % cand == 0:
            tb = cand
    return tb if tb else B  # fallback: single tile (block dims = full array dims)


def cnn_text_kernel(x_ref, w_ref, b_ref, outw_ref, pred_ref):
    """One batch-tile of the full forward.

    x_ref    : (TB, S, KDp)  im2col embedding windows, lane-padded to 128
    w_ref    : (KDp, Cp)     packed conv filters (all kernel sizes), lane-padded
    b_ref    : (1, Cp)       per-filter bias, lane-padded
    outw_ref : (Cp, Op)      output projection, lane-padded
    pred_ref : (TB, Op)      padded logits
    """
    tb, s, kdp = x_ref.shape
    cp = w_ref.shape[1]

    # Single MXU matmul does the conv for every kernel size / filter at once.
    x = x_ref[...].reshape(tb * s, kdp)                          # (TB*S, KDp)
    act = jnp.dot(x, w_ref[...], preferred_element_type=jnp.float32)

    # Sequence max-pool first, then bias + ReLU (exact; see header note).
    pooled = jnp.max(act.reshape(tb, s, cp), axis=1)             # (TB, Cp)
    pooled = jnp.maximum(pooled + b_ref[...], 0.0)

    # Output projection; padded channels are exactly 0 and padded outw rows are
    # 0, so they contribute nothing.
    pred_ref[...] = jnp.dot(pooled, outw_ref[...],
                            preferred_element_type=jnp.float32)


def cnn_text_forward(words, embedding, conv_w, conv_b, outputlayer, k_max):
    """words: (B, S) int32; returns pred logits (B, D_output) float32."""
    B, S = words.shape
    D = embedding.shape[1]
    C = conv_w.shape[1]
    O = outputlayer.shape[1]
    KD = k_max * D

    # Lane-dense padded widths.
    KDp = _round_up(KD, LANE)
    Cp = _round_up(C, LANE)
    Op = _round_up(O, LANE)

    # --- glue: embedding lookup + right zero-pad + im2col window build ---
    emb = jnp.take(embedding, words, axis=0)                         # (B, S, D)
    emb_pad = jnp.pad(emb, ((0, 0), (0, k_max - 1), (0, 0)))         # (B, S+K-1, D)
    win = jnp.stack([emb_pad[:, j:j + S, :] for j in range(k_max)],
                    axis=2)                                          # (B, S, K, D)
    x = win.reshape(B, S, KD)
    x = jnp.pad(x, ((0, 0), (0, 0), (0, KDp - KD)))                  # (B, S, KDp)

    # Packed conv weights zero-padded to (KDp, Cp); bias as a (1, Cp) row.
    w_p = jnp.zeros((KDp, Cp), jnp.float32).at[:KD, :C].set(conv_w)
    b_p = jnp.zeros((1, Cp), jnp.float32).at[0, :C].set(conv_b[0])

    # Output projection padded to (Cp, Op); padded rows/cols are zero.
    outw_p = jnp.zeros((Cp, Op), jnp.float32).at[:C, :O].set(outputlayer)

    TB = _pick_batch_tile(B, S, KDp)
    grid = (B // TB,)

    pred_p = pl.pallas_call(
        cnn_text_kernel,
        out_shape=jax.ShapeDtypeStruct((B, Op), jnp.float32),
        grid=grid,
        in_specs=[
            pl.BlockSpec((TB, S, KDp), lambda i: (i, 0, 0)),
            pl.BlockSpec((KDp, Cp), lambda i: (0, 0)),
            pl.BlockSpec((1, Cp), lambda i: (0, 0)),
            pl.BlockSpec((Cp, Op), lambda i: (0, 0)),
        ],
        out_specs=pl.BlockSpec((TB, Op), lambda i: (i, 0)),
        compiler_params=pltpu.CompilerParams(
            dimension_semantics=("parallel",)),
    )(x, w_p, b_p, outw_p)

    return pred_p[:, :O]


def init_params(key, D_input, D_output, upper, lower, D_dict, layernum):
    """Deterministic synthetic parameters matching CNNText.__init__ shapes."""
    D_cond = (upper - lower) * layernum
    K_max = upper - 1
    keys = jax.random.split(key, 2 + 2 * D_cond)

    # Embedding: torch.rand(D_dict, D_input) * sqrt(2 / (D_dict * D_input))
    embedding = (jax.random.uniform(keys[0], (D_dict, D_input), jnp.float32)
                 * math.sqrt(2.0 / (D_dict * D_input)))
    # outputlayer: torch.randn(D_cond, D_output)
    outputlayer = jax.random.normal(keys[1], (D_cond, D_output), jnp.float32)

    # Pack per-size conv filters into one (K_max * D_input, D_cond) matrix.
    conv_w = np.zeros((K_max * D_input, D_cond), np.float32)
    conv_b = np.zeros((1, D_cond), np.float32)
    c = 0
    for k_size in range(lower, upper):
        for _ in range(layernum):
            kf, kb = keys[2 + 2 * c], keys[3 + 2 * c]
            # CNNcond: torch.randn(D_input * D_ker, 1) * sqrt(2 / (D_ker * D_input))
            filt = (jax.random.normal(kf, (k_size * D_input,), jnp.float32)
                    * math.sqrt(2.0 / (k_size * D_input)))
            conv_w[:k_size * D_input, c] = np.asarray(filt)
            conv_b[0, c] = float(jax.random.normal(kb, (), jnp.float32))
            c += 1
    return embedding, jnp.asarray(conv_w), jnp.asarray(conv_b), outputlayer


def reference_forward(words, embedding, conv_w, conv_b, outputlayer, k_max):
    """Pure-JAX reference of the PyTorch forward (conv -> +bias -> ReLU -> max -> mm)."""
    emb = jnp.take(embedding, words, axis=0)
    B, S, D = emb.shape
    C = conv_w.shape[1]
    emb_pad = jnp.pad(emb, ((0, 0), (0, k_max - 1), (0, 0)))
    acc = jnp.zeros((B, S, C), jnp.float32)
    for j in range(k_max):
        acc = acc + jnp.einsum("bsd,dc->bsc",
                               emb_pad[:, j:j + S, :],
                               conv_w[j * D:(j + 1) * D, :])
    acc = jnp.maximum(acc + conv_b[0], 0.0)
    pooled = jnp.max(acc, axis=1)
    return pooled @ outputlayer


if __name__ == "__main__":
    # Small shapes consistent with CNNText(D_input, D_output, upper=5, lower=3,
    # D_dict, layernum=5): D_cond = (upper - lower) * layernum = 10.
    D_input, D_output = 16, 4
    upper, lower, layernum = 5, 3, 5
    D_dict = 64
    B, S = 2, 8
    K_max = upper - 1

    key = jax.random.PRNGKey(0)
    pkey, wkey = jax.random.split(key)
    embedding, conv_w, conv_b, outputlayer = init_params(
        pkey, D_input, D_output, upper, lower, D_dict, layernum)
    words = jax.random.randint(wkey, (B, S), 0, D_dict, dtype=jnp.int32)

    pred = cnn_text_forward(words, embedding, conv_w, conv_b, outputlayer, K_max)
    pred = jax.block_until_ready(pred)

    ref = reference_forward(words, embedding, conv_w, conv_b, outputlayer, K_max)
    np.testing.assert_allclose(np.asarray(pred), np.asarray(ref),
                               rtol=1e-5, atol=1e-5)
    print("KERNEL_OK")
</pallas_src>

<mosaic_0001>
module attributes {stable_mosaic.version = 11 : i64} {
  func.func @cnn_text_kernel(%arg0: i32, %arg1: memref<2x8x128xf32, #tpu.memory_space<vmem>>, %arg2: memref<128x128xf32, #tpu.memory_space<vmem>>, %arg3: memref<1x128xf32, #tpu.memory_space<vmem>>, %arg4: memref<128x128xf32, #tpu.memory_space<vmem>>, %arg5: memref<2x128xf32, #tpu.memory_space<vmem>>) attributes {dimension_semantics = [#tpu.dimension_semantics<parallel>], iteration_bounds = array<i64: 1>, scalar_prefetch = 0 : i64, scratch_operands = 0 : i64, tpu.core_type = #tpu.core_type<tc>, window_params = [{transform_indices = @transform_0, window_bounds = array<i64: 2, 8, 128>}, {pipeline_mode = #tpu.pipeline_mode<synchronous>, transform_indices = @transform_1, window_bounds = array<i64: 128, 128>}, {pipeline_mode = #tpu.pipeline_mode<synchronous>, transform_indices = @transform_2, window_bounds = array<i64: 1, 128>}, {pipeline_mode = #tpu.pipeline_mode<synchronous>, transform_indices = @transform_3, window_bounds = array<i64: 128, 128>}, {transform_indices = @transform_4, window_bounds = array<i64: 2, 128>}]} {
    %c0 = arith.constant 0 : index
    %c0_0 = arith.constant 0 : index
    %c0_1 = arith.constant 0 : index
    %0 = vector.load %arg1[%c0, %c0_0, %c0_1] : memref<2x8x128xf32, #tpu.memory_space<vmem>>, vector<2x8x128xf32>
    %1 = vector.shape_cast %0 : vector<2x8x128xf32> to vector<16x128xf32>
    %c0_2 = arith.constant 0 : index
    %c0_3 = arith.constant 0 : index
    %2 = vector.load %arg2[%c0_2, %c0_3] : memref<128x128xf32, #tpu.memory_space<vmem>>, vector<128x128xf32>
    %cst = arith.constant dense<0.000000e+00> : vector<16x128xf32>
    %3 = tpu.matmul %1, %2, %cst {dimension_numbers = #tpu.dot_dimension_numbers<[1], [0], [0], [1], [0, 0, 1, 1], [], []>} : vector<16x128xf32>, vector<128x128xf32>, vector<16x128xf32> -> vector<16x128xf32>
    %4 = vector.shape_cast %3 : vector<16x128xf32> to vector<2x8x128xf32>
    %cst_4 = arith.constant dense<0xFF800000> : vector<2x128xf32>
    %5 = vector.multi_reduction <maximumf>, %4, %cst_4 [1] : vector<2x8x128xf32> to vector<2x128xf32>
    %c0_5 = arith.constant 0 : index
    %c0_6 = arith.constant 0 : index
    %6 = vector.load %arg3[%c0_5, %c0_6] : memref<1x128xf32, #tpu.memory_space<vmem>>, vector<1x128xf32>
    %7 = vector.broadcast %6 : vector<1x128xf32> to vector<2x128xf32>
    %8 = arith.addf %5, %7 : vector<2x128xf32>
    %cst_7 = arith.constant 0.000000e+00 : f32
    %9 = vector.broadcast %cst_7 : f32 to vector<2x128xf32>
    %10 = arith.maximumf %8, %9 : vector<2x128xf32>
    %c0_8 = arith.constant 0 : index
    %c0_9 = arith.constant 0 : index
    %11 = vector.load %arg4[%c0_8, %c0_9] : memref<128x128xf32, #tpu.memory_space<vmem>>, vector<128x128xf32>
    %cst_10 = arith.constant dense<0.000000e+00> : vector<2x128xf32>
    %12 = tpu.matmul %10, %11, %cst_10 {dimension_numbers = #tpu.dot_dimension_numbers<[1], [0], [0], [1], [0, 0, 1, 1], [], []>} : vector<2x128xf32>, vector<128x128xf32>, vector<2x128xf32> -> vector<2x128xf32>
    %c0_11 = arith.constant 0 : index
    %c0_12 = arith.constant 0 : index
    %13 = vector.load %arg5[%c0_11, %c0_12] : memref<2x128xf32, #tpu.memory_space<vmem>>, vector<2x128xf32>
    tpu.vector_store %arg5[%c0_11, %c0_12], %12 {strides = array<i32>} : memref<2x128xf32, #tpu.memory_space<vmem>>, vector<2x128xf32>,
    return
  }
  func.func @transform_0(%arg0: i32) -> (i32, i32, i32) {
    %c0_i32 = arith.constant 0 : i32
    %c0_i32_0 = arith.constant 0 : i32
    %c0_i32_1 = arith.constant 0 : i32
    return %arg0, %c0_i32, %c0_i32_0 : i32, i32, i32
  }
  func.func @transform_1(%arg0: i32) -> (i32, i32) {
    %c0_i32 = arith.constant 0 : i32
    %c0_i32_0 = arith.constant 0 : i32
    %c0_i32_1 = arith.constant 0 : i32
    return %c0_i32, %c0_i32_0 : i32, i32
  }
  func.func @transform_2(%arg0: i32) -> (i32, i32) {
    %c0_i32 = arith.constant 0 : i32
    %c0_i32_0 = arith.constant 0 : i32
    %c0_i32_1 = arith.constant 0 : i32
    return %c0_i32, %c0_i32_0 : i32, i32
  }
  func.func @transform_3(%arg0: i32) -> (i32, i32) {
    %c0_i32 = arith.constant 0 : i32
    %c0_i32_0 = arith.constant 0 : i32
    %c0_i32_1 = arith.constant 0 : i32
    return %c0_i32, %c0_i32_0 : i32, i32
  }
  func.func @transform_4(%arg0: i32) -> (i32, i32) {
    %c0_i32 = arith.constant 0 : i32
    %c0_i32_0 = arith.constant 0 : i32
    return %arg0, %c0_i32 : i32, i32
  }
}

</mosaic_0001>

<bundles_post_ra>
// kernel: tpu_custom_call.1
= control target key start
LH: loop header
LB: loop body
LE: loop exit
PB: predicated region body
PF: predicated region fallthrough
CT: control target
= control target key end

     0   :  { %9 = vsyncpa [#allocation3], 0  ;;  %s549_s0 = inlined_call_operand.hbm [shape: f32[2,8,128], index: 0, kind: input, shape index: {}]   ;;  %s550_s1 = inlined_call_operand.hbm [shape: f32[128,128], index: 1, kind: input, shape index: {}]   ;;  %s551_s2 = inlined_call_operand.vmem [shape: f32[1,128], index: 2, kind: input, shape index: {}]   ;;  %s552_s3 = inlined_call_operand.hbm [shape: f32[128,128], index: 3, kind: input, shape index: {}]   ;;  %s553_s4 = inlined_call_operand.hbm [shape: f32[2,128], index: 4, kind: output, shape index: {}]  }
   0x1   :  { %10 = vsyncpa [#allocation6], 0 }
   0x2   :  { %11 = vsyncpa [#allocation4], 0  ;;  %s484_s15 = smov [#allocation5]   ;;  %s485_s17 = smov [#allocation2]  }
   0x3   :  { %s29_s16 = sshll.u32 %s484_s15, 4  ;;  %s17_s18 = sshll.u32 %s485_s17, 4  ;;  %s30_s16 = int_to_ptr.vmem [resolvable:$true] %s29_s16  ;;  %s18_s18 = int_to_ptr.vmem [resolvable:$true] %s17_s18 }
   0x4   :  { %s406_s19 = scalar_lea.vmem %s30_s16, 2048  ;;  %p411_p1 = scmp.lt.s32.totalorder %s30_s16, %s30_s16 }
   0x5   :  { %p407_p0 = scmp.ne.s32.totalorder %s30_s16, %s406_s19  ;;  %p412_p2 = scmp.lt.s32.totalorder %s406_s19, %s406_s19 }
   0x7   :  { %p413_p3 = por %p412_p2, %p411_p1 }
   0x9   :  { %p414_p4 = pnand %p413_p3, %p407_p0 }
   0xb   :  { %417 = shalt.err (!%p414_p4)
}
   0xc   :  { %s486_s20 = smov 128   ;;  %s487_s21 = smov 8  }
   0xd   :  { %35 = dma.hbm_to_vmem [thread:$0]  %s550_s1, 2048, %s30_s16, [#allocation6], %s486_s20, %s486_s20, %s487_s21  }
   0xe   :  { %s426_s24 = scalar_lea.vmem %s18_s18, 256  ;;  %p431_p6 = scmp.lt.s32.totalorder %s18_s18, %s18_s18 }
   0xf   :  { %p427_p5 = scmp.ne.s32.totalorder %s18_s18, %s426_s24  ;;  %p432_p7 = scmp.lt.s32.totalorder %s426_s24, %s426_s24 }
  0x11   :  { %p433_p8 = por %p432_p7, %p431_p6 }
  0x13   :  { %p434_p9 = pnand %p433_p8, %p427_p5 }
  0x15   :  { %437 = shalt.err (!%p434_p9)
}
  0x16   :  { %23 = dma.hbm_to_vmem [thread:$0]  %s549_s0, 256, %s18_s18, [#allocation3], %s486_s20, %s486_s20, %s487_s21  }
  0x17   :  { %s488_s27 = smov [#allocation7]  }
  0x18   :  { %s43_s28 = sshll.u32 %s488_s27, 4  ;;  %s44_s28 = int_to_ptr.vmem [resolvable:$true] %s43_s28 }
  0x19   :  { %s446_s29 = scalar_lea.vmem %s44_s28, 2048  ;;  %p451_p11 = scmp.lt.s32.totalorder %s44_s28, %s44_s28 }
  0x1a   :  { %p447_p10 = scmp.ne.s32.totalorder %s44_s28, %s446_s29  ;;  %p452_p12 = scmp.lt.s32.totalorder %s446_s29, %s446_s29 }
  0x1c   :  { %p453_p13 = por %p452_p12, %p451_p11 }
  0x1e   :  { %p454_p0 = pnand %p453_p13, %p447_p10 }
  0x20   :  { %457 = shalt.err (!%p454_p0)
}
  0x21   :  { %49 = dma.hbm_to_vmem [thread:$0]  %s552_s3, 2048, %s44_s28, [#allocation6], %s486_s20, %s486_s20, %s487_s21  }
  0x22   :  { %478 = dma.done.wait [#allocation3], 256  }
  0x23   :  { %479 = vsyncadd [#allocation3], 4294967040 }
  0x24   :  { %480 = dma.done.wait [#allocation6], 4096  }
  0x25   :  { %481 = vsyncadd [#allocation6], 4294963200  ;;  %v489_v0 = vmov 0.0   ;;  %v76_v1 = vld [vmem:[#allocation5 + $0x78] sm:$0xff]  ;;  %v75_v2 = vld [vmem:[#allocation5 + $0x70] sm:$0xff]  ;;  %vm490_vm0 = vmmov 0  }
  0x26   :  { %355 = vmatprep.subr.mxu1 %v489_v0  ;;  %320 = vmatprep.subr.mxu0 %v76_v1  ;;  %v74_v3 = vld [vmem:[#allocation5 + $0x68] sm:$0xff]  ;;  %v73_v4 = vld [vmem:[#allocation5 + $0x60] sm:$0xff]  ;;  %v59_v5 = vld [vmem:[#allocation2] sm:$0xff]  ;;  %vm194_vm1 = vcmask 1041409   ;;  %s491_s5 = smov [#allocation8]  }
  0x27   :  { %321 = vmatpush3.msra.mxu0 %v76_v1  ;;  %v72_v6 = vld [vmem:[#allocation5 + $0x58] sm:$0xff]  ;;  %352 = vmatprep.mubr.f32.mxu0 %v59_v5  ;;  %v189_v8 = vld [vmem:[#allocation7 + $0x70] sm:$0xff]  ;;  %v188_v10 = vld [vmem:[#allocation7 + $0x68] sm:$0xff]  ;;  %s274_s6 = sshll.u32 %s491_s5, 4  ;;  %s275_s6 = int_to_ptr.vmem [resolvable:$true] %s274_s6 }
  0x28   :  { %322 = vmatprep.subr.mxu0 %v75_v2  ;;  %v190_v7 = vld [vmem:[#allocation7 + $0x78] sm:$0xff]  ;;  %v71_v9 = vld [vmem:[#allocation5 + $0x50] sm:$0xff]  ;;  %v70_v11 = vld [vmem:[#allocation5 + $0x48] sm:$0xff]  ;;  %387 = vmatprep.mubr.msk.f32.mxu1 %vm490_vm0, %v489_v0  ;;  %s458_s7 = scalar_lea.vmem %s275_s6, 32  ;;  %p463_p2 = scmp.lt.s32.totalorder %s275_s6, %s275_s6 }
  0x29   :  { %323 = vmatpush3.msra.mxu0 %v75_v2  ;;  %356 = vmatpush3.msra.mxu1 %v190_v7  ;;  %v187_v12 = vld [vmem:[#allocation7 + $0x60] sm:$0xff]  ;;  %v186_v14 = vld [vmem:[#allocation7 + $0x58] sm:$0xff]  ;;  %v185_v16 = vld [vmem:[#allocation7 + $0x50] sm:$0xff]  ;;  %p459_p1 = scmp.ne.s32.totalorder %s275_s6, %s458_s7  ;;  %p464_p3 = scmp.lt.s32.totalorder %s458_s7, %s458_s7 }
  0x2a   :  { %324 = vmatprep.subr.mxu0 %v74_v3  ;;  %357 = vmatprep.subr.mxu1 %v489_v0  ;;  %v69_v13 = vld [vmem:[#allocation5 + $0x40] sm:$0xff]  ;;  %v68_v15 = vld [vmem:[#allocation5 + $0x38] sm:$0xff]  ;;  %v67_v17 = vld [vmem:[#allocation5 + $0x30] sm:$0xff] }
  0x2b   :  { %325 = vmatpush3.msra.mxu0 %v74_v3  ;;  %358 = vmatpush3.msra.mxu1 %v189_v8  ;;  %v66_v18 = vld [vmem:[#allocation5 + $0x28] sm:$0xff]  ;;  %v65_v19 = vld [vmem:[#allocation5 + $0x20] sm:$0xff]  ;;  %v64_v20 = vld [vmem:[#allocation5 + $0x18] sm:$0xff]  ;;  %p465_p4 = por %p464_p3, %p463_p2 }
  0x2c   :  { %326 = vmatprep.subr.mxu0 %v73_v4  ;;  %359 = vmatprep.subr.mxu1 %v489_v0  ;;  %v63_v21 = vld [vmem:[#allocation5 + $0x10] sm:$0xff]  ;;  %v62_v22 = vld [vmem:[#allocation5 + $0x8] sm:$0xff]  ;;  %v61_v23 = vld [vmem:[#allocation5] sm:$0xff] }
  0x2d   :  { %327 = vmatpush3.msra.mxu0 %v73_v4  ;;  %360 = vmatpush3.msra.mxu1 %v188_v10  ;;  %v60_v24 = vld [vmem:[#allocation2 + $0x8] sm:$0xff]  ;;  %v184_v25 = vld [vmem:[#allocation7 + $0x48] sm:$0xff]  ;;  %v183_v26 = vld [vmem:[#allocation7 + $0x40] sm:$0xff]  ;;  %p466_p5 = pnand %p465_p4, %p459_p1 }
  0x2e   :  { %328 = vmatprep.subr.mxu0 %v72_v6  ;;  %361 = vmatprep.subr.mxu1 %v489_v0  ;;  %v182_v27 = vld [vmem:[#allocation7 + $0x38] sm:$0xff]  ;;  %v181_v28 = vld [vmem:[#allocation7 + $0x30] sm:$0xff]  ;;  %v180_v29 = vld [vmem:[#allocation7 + $0x28] sm:$0xff] }
  0x2f   :  { %329 = vmatpush3.msra.mxu0 %v72_v6  ;;  %362 = vmatpush3.msra.mxu1 %v187_v12  ;;  %v179_v30 = vld [vmem:[#allocation7 + $0x20] sm:$0xff]  ;;  %v178_v31 = vld [vmem:[#allocation7 + $0x18] sm:$0xff]  ;;  %v177_v32 = vld [vmem:[#allocation7 + $0x10] sm:$0xff] }
  0x30   :  { %330 = vmatprep.subr.mxu0 %v71_v9  ;;  %363 = vmatprep.subr.mxu1 %v489_v0  ;;  %v176_v33 = vld [vmem:[#allocation7 + $0x8] sm:$0xff]  ;;  %v175_v34 = vld [vmem:[#allocation7] sm:$0xff]  ;;  %v284_v46 = vld [vmem:[%s551_s2] ss:$0 sm:$0xff] }
  0x31   :  { %331 = vmatpush3.msra.mxu0 %v71_v9  ;;  %364 = vmatpush3.msra.mxu1 %v186_v14 }
  0x32   :  { %332 = vmatprep.subr.mxu0 %v70_v11  ;;  %365 = vmatprep.subr.mxu1 %v489_v0 }
  0x33   :  { %333 = vmatpush3.msra.mxu0 %v70_v11  ;;  %366 = vmatpush3.msra.mxu1 %v185_v16 }
  0x34   :  { %334 = vmatprep.subr.mxu0 %v69_v13  ;;  %367 = vmatprep.subr.mxu1 %v489_v0 }
  0x35   :  { %335 = vmatpush3.msra.mxu0 %v69_v13  ;;  %368 = vmatpush3.msra.mxu1 %v184_v25 }
  0x36   :  { %336 = vmatprep.subr.mxu0 %v68_v15  ;;  %369 = vmatprep.subr.mxu1 %v489_v0 }
  0x37   :  { %337 = vmatpush3.msra.mxu0 %v68_v15  ;;  %370 = vmatpush3.msra.mxu1 %v183_v26 }
  0x38   :  { %338 = vmatprep.subr.mxu0 %v67_v17  ;;  %371 = vmatprep.subr.mxu1 %v489_v0 }
  0x39   :  { %339 = vmatpush3.msra.mxu0 %v67_v17  ;;  %372 = vmatpush3.msra.mxu1 %v182_v27 }
  0x3a   :  { %340 = vmatprep.subr.mxu0 %v66_v18  ;;  %373 = vmatprep.subr.mxu1 %v489_v0 }
  0x3b   :  { %341 = vmatpush3.msra.mxu0 %v66_v18  ;;  %374 = vmatpush3.msra.mxu1 %v181_v28 }
  0x3c   :  { %342 = vmatprep.subr.mxu0 %v65_v19  ;;  %375 = vmatprep.subr.mxu1 %v489_v0 }
  0x3d   :  { %343 = vmatpush3.msra.mxu0 %v65_v19  ;;  %376 = vmatpush3.msra.mxu1 %v180_v29 }
  0x3e   :  { %344 = vmatprep.subr.mxu0 %v64_v20  ;;  %377 = vmatprep.subr.mxu1 %v489_v0 }
  0x3f   :  { %345 = vmatpush3.msra.mxu0 %v64_v20  ;;  %378 = vmatpush3.msra.mxu1 %v179_v30 }
  0x40   :  { %346 = vmatprep.subr.mxu0 %v63_v21  ;;  %379 = vmatprep.subr.mxu1 %v489_v0 }
  0x41   :  { %347 = vmatpush3.msra.mxu0 %v63_v21  ;;  %380 = vmatpush3.msra.mxu1 %v178_v31 }
  0x42   :  { %348 = vmatprep.subr.mxu0 %v62_v22  ;;  %381 = vmatprep.subr.mxu1 %v489_v0 }
  0x43   :  { %349 = vmatpush3.msra.mxu0 %v62_v22  ;;  %382 = vmatpush3.msra.mxu1 %v177_v32 }
  0x44   :  { %350 = vmatprep.subr.mxu0 %v61_v23  ;;  %383 = vmatprep.subr.mxu1 %v489_v0 }
  0x45   :  { %351 = vmatpush3.msra.mxu0 %v61_v23  ;;  %384 = vmatpush3.msra.mxu1 %v176_v33 }
  0x46   :  { %353 = vmatmul.mubr.f32.vlgmr.msra.gmra.mxu0 %v60_v24  ;;  %385 = vmatprep.subr.mxu1 %v489_v0 }
  0x47   :  { %386 = vmatpush3.msra.mxu1 %v175_v34 }
 0x106   :  { %v354_v35 = vpop.f32.mrf.mxu0 }
 0x107   :  { %v158_v36 = vrot.slane %v354_v35, 4 }
 0x108   :  { %v143_v37 = vpop.f32.mrf.mxu0 }
 0x109   :  { %v159_v38 = vmax.f32 %v354_v35, %v158_v36  ;;  %v152_v39 = vrot.slane %v143_v37, 4 }
 0x10b   :  { %v160_v40 = vrot.slane %v159_v38, 2  ;;  %v153_v41 = vmax.f32 %v143_v37, %v152_v39 }
 0x10d   :  { %v161_v42 = vmax.f32 %v159_v38, %v160_v40  ;;  %v154_v43 = vrot.slane %v153_v41, 2 }
 0x10f   :  { %v162_v44 = vrot.slane %v161_v42, 1  ;;  %v155_v45 = vmax.f32 %v153_v41, %v154_v43 }
 0x111   :  { %v163_v47 = vmax.f32 %v161_v42, %v162_v44  ;;  %v156_v48 = vrot.slane %v155_v45, 1 }
 0x113   :  { %v157_v49 = vmax.f32 %v155_v45, %v156_v48  ;;  %v172_v50 = vadd.f32 %v284_v46, %v163_v47 }
 0x115   :  { %v171_v51 = vadd.f32 %v284_v46, %v157_v49  ;;  %v174_v52 = vmax.f32 %v172_v50, 0.0 }
 0x117   :  { %v173_v53 = vmax.f32 %v171_v51, 0.0  ;;  %v193_v54 = vrot.slane %v174_v52, 7 }
 0x119   :  { %v195_v55 = vsel %vm194_vm1, %v193_v54, %v173_v53 }
 0x11a   :  { %388 = vmatmul.mubr.f32.vlgmr.msra.gmra.mxu1 %v195_v55 }
 0x1da   :  { %v263_v56 = vpop.f32.mrf.mxu1 }
 0x1db   :  { %267 = vst [vmem:[#allocation8] sm:$0x3] %v263_v56 }
 0x1dc   :  { %v389_v57 = vpop.f32.mrf.mxu1 }
 0x1dd   :  { %469 = shalt.err (!%p466_p5)
}
 0x1de   :  { %277 = dma.vmem_to_hbm [thread:$0]  %s275_s6, 32, %s553_s4, [#allocation4]  }
 0x1df   :  { %482 = dma.done.wait [#allocation4], 32  }
 0x1e0   :  { %483 = vsyncadd [#allocation4], 4294967264 }
 0x1e1   :  { %281 = vsyncpa [#allocation3], 1 }
 0x1e2   :  { %282 = vsyncpa [#allocation6], 1 }
 0x1e3   :  { %283 = vsyncpa [#allocation4], 1 }

</bundles_post_ra>
